<compile_context>
chip_gen: v5e
topology: v5e:2x2
jax: 0.10.0
libtpu: 0.0.40
codegen_flags: <defaults>
</compile_context>

<pallas_src>
import functools

import jax
import jax.numpy as jnp
from jax import lax
from jax.experimental import pallas as pl
from jax.experimental.pallas import tpu as pltpu


def _metric_union_kernel(pred_ref, gt_ref, out_ref, *,
                         hw, hw_tile, num_steps, steps_per_core):
    # pred_ref: (C, T) float    gt_ref: (1, T) int32
    # out_ref : (C, 1) float32  (resident accumulator over the HW axis)
    p = pl.program_id(0)          # core-split axis (2)
    j = pl.program_id(2)          # HW step within this core's half
    raw_block = p * steps_per_core + j

    @pl.when(j == 0)
    def _init():
        out_ref[...] = jnp.zeros_like(out_ref)

    # Skip the (at most one) duplicate block core 1 gets when num_steps is odd
    # (its input index is clamped in the index_map; we just don't accumulate).
    @pl.when(raw_block < num_steps)
    def _compute():
        pred = pred_ref[...]
        gt = gt_ref[...]
        c, t = pred.shape

        iota_c = lax.broadcasted_iota(jnp.int32, (c, t), 0)

        # argmax over the class (sublane) axis with first-occurrence
        # tie-breaking, matching torch.argmax / jnp.argmax.
        max_val = jnp.max(pred, axis=0, keepdims=True)                  # (1, T)
        is_max = pred == max_val
        argmax_idx = jnp.min(jnp.where(is_max, iota_c, c), axis=0, keepdims=True)

        pred_onehot = iota_c == argmax_idx          # (C, T) bool
        gt_onehot = iota_c == gt                    # (C, T) bool
        union = jnp.logical_or(pred_onehot, gt_onehot)

        ones_t = jnp.ones((t, 1), dtype=jnp.bfloat16)

        def _accumulate(u):
            # Per-class count via the (otherwise idle) MXU: exact for 0/1
            # bf16 inputs with an f32 accumulator (counts <= 2^24).
            out_ref[...] += jnp.dot(u.astype(jnp.bfloat16), ones_t,
                                    preferred_element_type=jnp.float32)

        if hw % hw_tile != 0:
            # Only the last HW tile has overhanging (unspecified) lanes; pay
            # the mask there and take the fast path on every other tile.
            is_last = raw_block == num_steps - 1

            @pl.when(jnp.logical_not(is_last))
            def _full():
                _accumulate(union)

            @pl.when(is_last)
            def _masked():
                lane_pos = (raw_block * hw_tile
                            + lax.broadcasted_iota(jnp.int32, (1, t), 1))
                _accumulate(jnp.logical_and(union, lane_pos < hw))
        else:
            _accumulate(union)


def _choose_hw_tiling(hw, c, pred_itemsize):
    """Pick a lane-aligned HW tile size and the number of HW tiles.

    VMEM accounting per lane column (double-buffered pipeline):
      * pred tile sublane-pads to the dtype's sublane packing,
      * the (1, T) int32 gt tile sublane-pads to 8 rows.
    """
    sub = 16 if pred_itemsize == 2 else 8
    pred_rows = -(-max(c, 1) // sub) * sub
    bytes_per_lane = 2 * (pred_rows * pred_itemsize + 8 * 4)   # x2: double buffer
    budget_bytes = 16 * 1024 * 1024
    budget_tile = max(128, (budget_bytes // bytes_per_lane) // 128 * 128)
    # Keep at least two HW tiles per image (when HW allows) so the leading
    # size-2 "core" grid axis gives both v7x TensorCores real work.
    split_tile = max(128, (hw // 2) // 128 * 128)
    hw_tile = int(min(budget_tile, split_tile, 65536))
    num_steps = pl.cdiv(hw, hw_tile)
    return hw_tile, num_steps


def metric_union(pred_nchw, gt, smooth=1e-10):
    """pred_nchw: (N, C, H, W) float, gt: (N, H, W) int. Returns (N, C) float32."""
    n, c, h, w = pred_nchw.shape
    hw = h * w

    # Natural layout, no pad / transpose / upcast (bf16 pred stays bf16).
    pred = pred_nchw.reshape(n, c, hw)
    gt2 = gt.reshape(n, 1, hw).astype(jnp.int32)

    hw_tile, num_steps = _choose_hw_tiling(hw, c, pred.dtype.itemsize)
    steps_per_core = pl.cdiv(num_steps, 2)

    def hw_block(p_, j_):
        # Clamp so the (at most one) extra step on core 1 re-reads a valid
        # block instead of going fully out of bounds; the kernel skips its
        # accumulation.
        return jnp.minimum(p_ * steps_per_core + j_, num_steps - 1)

    partial = pl.pallas_call(
        functools.partial(_metric_union_kernel, hw=hw, hw_tile=hw_tile,
                          num_steps=num_steps, steps_per_core=steps_per_core),
        out_shape=jax.ShapeDtypeStruct((2, n, c, 1), jnp.float32),
        grid=(2, n, steps_per_core),
        in_specs=[
            pl.BlockSpec((None, c, hw_tile), lambda p, i, j: (i, 0, hw_block(p, j))),
            pl.BlockSpec((None, 1, hw_tile), lambda p, i, j: (i, 0, hw_block(p, j))),
        ],
        out_specs=pl.BlockSpec((None, None, c, 1), lambda p, i, j: (p, i, 0, 0)),
        compiler_params=pltpu.CompilerParams(
            dimension_semantics=("parallel", "parallel", "arbitrary"),
            vmem_limit_bytes=40 * 1024 * 1024),
    )(pred, gt2)

    # Sum the two per-core partials and add smooth once.
    return jnp.sum(partial[..., 0], axis=0) + jnp.float32(smooth)


def _reference(pred_nchw, gt, smooth=1e-10):
    num_classes = pred_nchw.shape[1]
    pred_idx = jnp.argmax(pred_nchw, axis=1)                          # (N, H, W)
    pred_oh = jax.nn.one_hot(pred_idx, num_classes, dtype=jnp.int32)  # (N, H, W, C)
    gt_oh = jax.nn.one_hot(gt, num_classes, dtype=jnp.int32)
    union = jnp.logical_or(pred_oh, gt_oh)
    return jnp.sum(union, axis=(1, 2)).astype(jnp.float32) + jnp.float32(smooth)


if __name__ == "__main__":
    key = jax.random.PRNGKey(0)
    k1, k2, k3, k4 = jax.random.split(key, 4)

    # Case 1: HW a multiple of the lane width (two tiles -> both cores busy).
    N, C, H, W = 2, 4, 16, 16
    pred = jax.random.normal(k1, (N, C, H, W), dtype=jnp.float32)
    gt = jax.random.randint(k2, (N, H, W), 0, C, dtype=jnp.int32)
    out = metric_union(pred, gt)
    jax.block_until_ready(out)
    ref = _reference(pred, gt)
    assert out.shape == (N, C), out.shape
    assert jnp.allclose(out, ref, rtol=0, atol=1e-5), (out, ref)

    # Case 2: ragged HW (exercises the overhanging / masked last tile and the
    # skipped duplicate block on the second core).
    N2, C2, H2, W2 = 2, 3, 9, 11
    pred2 = jax.random.normal(k3, (N2, C2, H2, W2), dtype=jnp.float32)
    gt_2 = jax.random.randint(k4, (N2, H2, W2), 0, C2, dtype=jnp.int32)
    out2 = metric_union(pred2, gt_2)
    jax.block_until_ready(out2)
    ref2 = _reference(pred2, gt_2)
    assert out2.shape == (N2, C2), out2.shape
    assert jnp.allclose(out2, ref2, rtol=0, atol=1e-5), (out2, ref2)

    print("KERNEL_OK")
</pallas_src>

<mosaic_0001>
module attributes {stable_mosaic.version = 11 : i64} {
  func.func @_metric_union_kernel(%arg0: i32, %arg1: i32, %arg2: i32, %arg3: memref<1x4x128xf32, #tpu.memory_space<vmem>>, %arg4: memref<1x1x128xi32, #tpu.memory_space<vmem>>, %arg5: memref<1x1x4x1xf32, #tpu.memory_space<vmem>>) attributes {dimension_semantics = [#tpu.dimension_semantics<parallel>, #tpu.dimension_semantics<parallel>, #tpu.dimension_semantics<arbitrary>], iteration_bounds = array<i64: 2, 2, 1>, scalar_prefetch = 0 : i64, scratch_operands = 0 : i64, tpu.core_type = #tpu.core_type<tc>, window_params = [{transform_indices = @transform_0, window_bounds = array<i64: 1, 4, 128>}, {transform_indices = @transform_1, window_bounds = array<i64: 1, 1, 128>}, {transform_indices = @transform_2, window_bounds = array<i64: 1, 1, 4, 1>}]} {
    %c1_i32 = arith.constant 1 : i32
    %0 = arith.muli %arg0, %c1_i32 : i32
    %1 = arith.addi %0, %arg2 : i32
    %c0_i32 = arith.constant 0 : i32
    %2 = arith.cmpi eq, %arg2, %c0_i32 : i32
    %3 = arith.extui %2 : i1 to i32
    %c0_i32_0 = arith.constant 0 : i32
    %4 = arith.cmpi ne, %3, %c0_i32_0 : i32
    scf.if %4 {
      %cst = arith.constant 0.000000e+00 : f32
      %8 = vector.broadcast %cst : f32 to vector<4x1xf32>
      %c0 = arith.constant 0 : index
      %c0_2 = arith.constant 0 : index
      %c0_3 = arith.constant 0 : index
      %c0_4 = arith.constant 0 : index
      %9 = vector.load %arg5[%c0, %c0_2, %c0_3, %c0_4] : memref<1x1x4x1xf32, #tpu.memory_space<vmem>>, vector<1x1x4x1xf32>
      %10 = vector.shape_cast %9 : vector<1x1x4x1xf32> to vector<4x1xf32>
      %11 = vector.shape_cast %8 : vector<4x1xf32> to vector<1x1x4x1xf32>
      tpu.vector_store %arg5[%c0, %c0_2, %c0_3, %c0_4], %11 {strides = array<i32>} : memref<1x1x4x1xf32, #tpu.memory_space<vmem>>, vector<1x1x4x1xf32>,
    } else {
    }
    %c2_i32 = arith.constant 2 : i32
    %5 = arith.cmpi slt, %1, %c2_i32 : i32
    %6 = arith.extui %5 : i1 to i32
    %c0_i32_1 = arith.constant 0 : i32
    %7 = arith.cmpi ne, %6, %c0_i32_1 : i32
    scf.if %7 {
      %c0 = arith.constant 0 : index
      %c0_2 = arith.constant 0 : index
      %c0_3 = arith.constant 0 : index
      %8 = vector.load %arg3[%c0, %c0_2, %c0_3] : memref<1x4x128xf32, #tpu.memory_space<vmem>>, vector<1x4x128xf32>
      %9 = vector.shape_cast %8 : vector<1x4x128xf32> to vector<4x128xf32>
      %c0_4 = arith.constant 0 : index
      %c0_5 = arith.constant 0 : index
      %c0_6 = arith.constant 0 : index
      %10 = vector.load %arg4[%c0_4, %c0_5, %c0_6] : memref<1x1x128xi32, #tpu.memory_space<vmem>>, vector<1x1x128xi32>
      %11 = vector.shape_cast %10 : vector<1x1x128xi32> to vector<1x128xi32>
      %12 = tpu.iota {dimensions = array<i32: 0>} : vector<4x128xi32>
      %cst = arith.constant dense<0xFF800000> : vector<128xf32>
      %13 = vector.multi_reduction <maximumf>, %9, %cst [0] : vector<4x128xf32> to vector<128xf32>
      %14 = vector.shape_cast %13 : vector<128xf32> to vector<1x128xf32>
      %15 = vector.broadcast %14 : vector<1x128xf32> to vector<4x128xf32>
      %16 = arith.cmpf oeq, %9, %15 : vector<4x128xf32>
      %c4_i32 = arith.constant 4 : i32
      %17 = vector.broadcast %c4_i32 : i32 to vector<4x128xi32>
      %18 = arith.select %16, %12, %17 : vector<4x128xi1>, vector<4x128xi32>
      %cst_7 = arith.constant dense<2147483647> : vector<128xi32>
      %19 = vector.multi_reduction <minsi>, %18, %cst_7 [0] : vector<4x128xi32> to vector<128xi32>
      %20 = vector.shape_cast %19 : vector<128xi32> to vector<1x128xi32>
      %21 = vector.broadcast %20 : vector<1x128xi32> to vector<4x128xi32>
      %22 = arith.cmpi eq, %12, %21 : vector<4x128xi32>
      %23 = vector.broadcast %11 : vector<1x128xi32> to vector<4x128xi32>
      %24 = arith.cmpi eq, %12, %23 : vector<4x128xi32>
      %25 = arith.ori %22, %24 : vector<4x128xi1>
      %cst_8 = arith.constant 1.000000e+00 : bf16
      %26 = vector.broadcast %cst_8 : bf16 to vector<128x1xbf16>
      %c0_9 = arith.constant 0 : index
      %c0_10 = arith.constant 0 : index
      %c0_11 = arith.constant 0 : index
      %c0_12 = arith.constant 0 : index
      %27 = vector.load %arg5[%c0_9, %c0_10, %c0_11, %c0_12] : memref<1x1x4x1xf32, #tpu.memory_space<vmem>>, vector<1x1x4x1xf32>
      %28 = vector.shape_cast %27 : vector<1x1x4x1xf32> to vector<4x1xf32>
      %29 = arith.extui %25 : vector<4x128xi1> to vector<4x128xi32>
      %30 = arith.sitofp %29 : vector<4x128xi32> to vector<4x128xf32>
      %31 = arith.truncf %30 : vector<4x128xf32> to vector<4x128xbf16>
      %cst_13 = arith.constant dense<0.000000e+00> : vector<4x1xf32>
      %32 = tpu.matmul %31, %26, %cst_13 {dimension_numbers = #tpu.dot_dimension_numbers<[1], [0], [0], [1], [0, 0, 1, 1], [], []>} : vector<4x128xbf16>, vector<128x1xbf16>, vector<4x1xf32> -> vector<4x1xf32>
      %33 = arith.addf %28, %32 : vector<4x1xf32>
      %c0_14 = arith.constant 0 : index
      %c0_15 = arith.constant 0 : index
      %c0_16 = arith.constant 0 : index
      %c0_17 = arith.constant 0 : index
      %34 = vector.load %arg5[%c0_14, %c0_15, %c0_16, %c0_17] : memref<1x1x4x1xf32, #tpu.memory_space<vmem>>, vector<1x1x4x1xf32>
      %35 = vector.shape_cast %34 : vector<1x1x4x1xf32> to vector<4x1xf32>
      %36 = vector.shape_cast %33 : vector<4x1xf32> to vector<1x1x4x1xf32>
      tpu.vector_store %arg5[%c0_14, %c0_15, %c0_16, %c0_17], %36 {strides = array<i32>} : memref<1x1x4x1xf32, #tpu.memory_space<vmem>>, vector<1x1x4x1xf32>,
    } else {
    }
    return
  }
  func.func @transform_0(%arg0: i32, %arg1: i32, %arg2: i32) -> (i32, i32, i32) {
    %c1_i32 = arith.constant 1 : i32
    %0 = arith.muli %arg0, %c1_i32 : i32
    %1 = arith.addi %0, %arg2 : i32
    %c1_i32_0 = arith.constant 1 : i32
    %2 = arith.minsi %1, %c1_i32_0 : i32
    %c0_i32 = arith.constant 0 : i32
    %c0_i32_1 = arith.constant 0 : i32
    return %arg1, %c0_i32, %2 : i32, i32, i32
  }
  func.func @transform_1(%arg0: i32, %arg1: i32, %arg2: i32) -> (i32, i32, i32) {
    %c1_i32 = arith.constant 1 : i32
    %0 = arith.muli %arg0, %c1_i32 : i32
    %1 = arith.addi %0, %arg2 : i32
    %c1_i32_0 = arith.constant 1 : i32
    %2 = arith.minsi %1, %c1_i32_0 : i32
    %c0_i32 = arith.constant 0 : i32
    %c0_i32_1 = arith.constant 0 : i32
    return %arg1, %c0_i32, %2 : i32, i32, i32
  }
  func.func @transform_2(%arg0: i32, %arg1: i32, %arg2: i32) -> (i32, i32, i32, i32) {
    %c0_i32 = arith.constant 0 : i32
    %c0_i32_0 = arith.constant 0 : i32
    %c0_i32_1 = arith.constant 0 : i32
    return %arg0, %arg1, %c0_i32, %c0_i32_0 : i32, i32, i32, i32
  }
}

</mosaic_0001>

<bundles_post_ra>
// kernel: tpu_custom_call.1
= control target key start
LH: loop header
LB: loop body
LE: loop exit
PB: predicated region body
PF: predicated region fallthrough
CT: control target
= control target key end

     0   :  { %7 = vsyncpa [#allocation3], 0  ;;  %s838_s0 = inlined_call_operand.hbm [shape: f32[2,4,256], index: 0, kind: input, shape index: {}]   ;;  %s839_s1 = inlined_call_operand.hbm [shape: s32[2,1,256], index: 1, kind: input, shape index: {}]   ;;  %s840_s2 = inlined_call_operand.vmem [shape: f32[2,2,4,1], index: 2, kind: output, shape index: {}]  }
   0x1   :  { %9 = vsyncpa [#allocation3 + $0x1], 0 }
   0x2   :  { %10 = vsyncpa [#allocation5], 0 }
   0x3   :  { %12 = vsyncpa [#allocation5 + $0x1], 0  ;;  %s683_s9 = smov 0   ;;  %s685_s10 = smov 0  }
   0x4   :  { %s687_s11 = smov 0   ;;  %s689_s12 = smov 0  }
   0x5   :  { %s691_s13 = smov 0   ;;  %s693_s14 = smov 0  }
   0x6   :  { %s695_s15 = smov 0   ;;  %s697_s16 = smov 0  }
   0x7 LB: > { %s435_s17 = sadd.s32 4294967295, %s663_s16   ;;  %s33_s18 = sadd.s32 1, %s655_s14  ;;  %s663_s16 = sphi %s697_s16, %s18_s16   ;;  %s659_s15 = sphi %s695_s15, %s850_s15   ;;  %s655_s14 = sphi %s693_s14, %s849_s14   ;;  %s651_s13 = sphi %s691_s13, %s848_s13   ;;  %s647_s12 = sphi %s689_s12, %s847_s12   ;;  %s643_s11 = sphi %s687_s11, %s846_s11   ;;  %s639_s10 = sphi %s685_s10, %s845_s10   ;;  %s635_s9 = sphi %s683_s9, %s844_s9  }
   0x8   : > { %p35_p0 = scmp.ge.s32.totalorder %s33_s18, 2  ;;  %s37_s19 = sadd.s32 1, %s659_s15 }
   0x9   : > { %p42_p1 = scmp.lt.s32.totalorder %s659_s15, 1  ;;  %s52_s20 = sadd.s32 1, %s643_s11 }
   0xa   : > { %s852_s18 = smov (%p35_p0, %s33_s18), 0  ;;  %s854_s19 = smov (!%p35_p0, %s37_s19), %s659_s15 }
   0xb   : > { %s43_s21 = scalar_select %p42_p1, %s659_s15, 1 }
   0xc   : > { %p39_p2 = scmp.ge.s32.totalorder %s854_s19, 2  ;;  %s47_s22 = ssub.s32 %s655_s14, %s852_s18 }
   0xd   : > { %p59_p3 = scmp.ne.s32.totalorder %s643_s11, %s639_s10  ;;  %p60_p4 = scmp.eq.s32.totalorder %s663_s16, 0 }
   0xe   : > { %s856_s19 = smov (%p39_p2, %s854_s19), 0  ;;  %p65_p6 = scmp.ne.s32.totalorder %s639_s10, %s635_s9 }
   0xf   : > { %p737_p5 = por %p60_p4, %p59_p3  ;;  %p45_p7 = scmp.lt.s32.totalorder %s856_s19, 1 }
  0x10   : > { %p66_p8 = scmp.eq.s32.totalorder %s435_s17, 0  ;;  %p464_p9 = scmp.lt.s32.totalorder %s663_s16, 4 }
  0x11   : > { %s46_s24 = scalar_select %p45_p7, %s856_s19, 1 }
  0x12   : > { %p745_p10 = por %p66_p8, %p65_p6  ;;  %s750_s26 = sand.u32 1, %s643_s11  }
  0x13   : > { %s48_s27 = ssub.s32 %s43_s21, %s46_s24  ;;  %s439_s29 = sshll.u32 %s750_s26, 2 }
  0x14   : > { %s49_s28 = sor.u32 %s48_s27, %s47_s22  ;;  %s440_s30 = sshll.u32 %s655_s14, 1 }
  0x15   : > { %p50_p11 = scmp.eq.s32.totalorder %s49_s28, 0  ;;  %s155_s3 = scalar_lea.vmem [#allocation2], %s439_s29 }
  0x16   : > { %s168_s4 = sshll.u32 %s155_s3, 4  ;;  %s162_s6 = sadd.s32 %s440_s30, %s43_s21  ;;  %s169_s4 = int_to_ptr.vmem [resolvable:$true] %s168_s4 }
  0x17   : > { %s755_s5 = scalar_select %p50_p11, %s643_s11, %s52_s20  }
  0x18   : > { %s441_s7 = sshll.u32 %s162_s6, 2  ;;  %p761_p12 = pnand %p464_p9, %p737_p5 }
  0x19   : > { %s164_s22 = scalar_lea.hbm %s838_s0, %s441_s7  ;;  %p443_p13 = scmp.ge.s32.totalorder %s663_s16, 1 }
  0x1a   : > { %s166_s24 = sshll.u32 %s164_s22, 4  ;;  %p195_p0 = scmp.lt.s32.totalorder %s663_s16, 5  ;;  %s167_s24 = int_to_ptr.hbm [resolvable:$true] %s166_s24 }
  0x1b   : > { %s152_s20 = scalar_lea.sflag [#allocation3], %s750_s26  ;;  %s186_s27 = scalar_lea.hbm %s839_s1, %s162_s6 }
  0x1c   : > { %460 = dma.hbm_to_vmem [thread:$0]  (!%p761_p12), %s167_s24, 64, %s169_s4, %s152_s20  }
  0x1d   : > { %p196_p1 = pnand %p443_p13, %p195_p0  ;;  %s188_s28 = sshll.u32 %s186_s27, 4  ;;  %s189_s28 = int_to_ptr.hbm [resolvable:$true] %s188_s28 }
  0x1e   : > { %s178_s29 = scalar_lea.vmem [#allocation4], %s750_s26  ;;  %s176_s3 = scalar_lea.sflag [#allocation5], %s750_s26 }
  0x1f   : > { %s190_s30 = sshll.u32 %s178_s29, 4  ;;  %199 = sbr.rel (%p196_p1) target bundleno = 214 (0xd6), region = 28  ;;  %s191_s30 = int_to_ptr.vmem [resolvable:$true] %s190_s30 }
  0x20   : > { %463 = dma.hbm_to_vmem [thread:$0]  (!%p761_p12), %s189_s28, 16, %s191_s30, %s176_s3  }
  0x21   : > { %s781_s7 = sand.u32 (!%p196_p1), 1, %s639_s10  }
  0x22   : > { %s444_s4 = sshll.u32 (!%p196_p1), %s781_s7, 2  ;;  %s202_s9 = scalar_lea.sflag (!%p196_p1), [#allocation3], %s781_s7 }
  0x23   : > { %s205_s17 = scalar_lea.vmem (!%p196_p1), [#allocation2], %s444_s4 }
  0x24   : > { %626 = dma.done.wait (%p745_p10), %s202_s9, 64  }
  0x25   : > { %628 = vsyncadd (%p745_p10), %s202_s9, 4294967232  ;;  %s212_s26 = scalar_lea.sflag [#allocation5], %s781_s7  ;;  %s214_s6 = scalar_lea.vmem [#allocation4], %s781_s7 }
  0x26   : > { %630 = dma.done.wait (%p745_p10), %s212_s26, 16  }
  0x27   : > { %632 = vsyncadd (%p745_p10), %s212_s26, 4294967280  ;;  %p249_p2 = scmp.lt.s32.totalorder %s651_s13, 1  ;;  %p251_p3 = scmp.lt.s32.totalorder %s647_s12, 1  ;;  %vm263_vm0 = vcmask 3072   ;;  %v665_v0 = vmov 0.0  }
  0x28   : > { %p447_p4 = scmp.ge.s32.totalorder %s651_s13, 2 }
  0x29   : > { %s250_s8 = scalar_select %p249_p2, %s651_s13, 1 }
  0x2a   : > { %s858_s12 = smov (!%p251_p3, %s647_s12), 1 }
  0x2b   : > { %s445_s22 = sshll.u32 %s250_s8, 1  ;;  %268 = sbr.rel (%p447_p4) target bundleno = 214 (0xd6), region = 44 }
  0x2c   : > { %s254_s24 = sadd.s32 %s445_s22, %s858_s12 }
  0x2d   : > { %s446_s20 = sshll.u32 %s254_s24, 2 }
  0x2e   : > { %s802_s27 = scalar_lea.vmem %s840_s2, %s446_s20 }
  0x2f   : > { %264 = vst.msk [vmem:[%s802_s27] sm:$0xf] %vm263_vm0, %v665_v0 }
  0x30   : > { %v269_v1 = vld [vmem:[%s205_s17] sm:$0xf]  ;;  %v666_v2 = vmov 1065369472   ;;  %vm273_vm1 = vcmask 1043456   ;;  %v271_v7 = vlaneseq }
  0x31   : > { %301 = vmatpush.bf16.msra.mxu0 %v666_v2  ;;  %v274_v3 = vsel %vm273_vm1, %v269_v1, -inf  ;;  %v532_v17 = vld [vmem:[%s214_s6] ss:$0 sm:$0xff]  ;;  %v667_v21 = vmov 1.0|1.0  }
  0x32   : > { %v275_v4 = vrot.slane %v274_v3, 4  ;;  %v272_v10 = vshrl.u32 %v271_v7, 7 }
  0x34   : > { %v276_v5 = vmax.f32 %v274_v3, %v275_v4  ;;  %vm295_vm6 = vcmp.eq.s32.totalorder %v272_v10, %v532_v17 }
  0x35   : > { %302 = vmatpush.bf16.msra.mxu0 %v666_v2 }
  0x36   : > { %v277_v6 = vrot.slane %v276_v5, 2  ;;  %v297_v22 = vld [vmem:[%s802_s27] sm:$0xf] }
  0x38   : > { %v278_v8 = vmax.f32 %v276_v5, %v277_v6 }
  0x39   : > { %303 = vmatpush.bf16.msra.mxu0 %v666_v2 }
  0x3a   : > { %v279_v9 = vrot.slane %v278_v8, 1 }
  0x3c   : > { %v280_v11 = vmax.f32 %v278_v8, %v279_v9 }
  0x3d   : > { %304 = vmatpush.bf16.msra.mxu0 %v666_v2 }
  0x3e   : > { %vm281_vm2 = vcmp.eq.f32.partialorder %v269_v1, %v280_v11 }
  0x3f   : > { %v282_v12 = vsel %vm281_vm2, %v272_v10, 4 }
  0x40   : > { %v283_v13 = vsel %vm273_vm1, %v282_v12, 2147483647 }
  0x41   : > { %305 = vmatpush.bf16.msra.mxu0 %v666_v2  ;;  %v284_v14 = vrot.slane %v283_v13, 4 }
  0x43   : > { %vm285_vm3 = vcmp.lt.s32.totalorder %v283_v13, %v284_v14 }
  0x44   : > { %v286_v15 = vsel %vm285_vm3, %v283_v13, %v284_v14 }
  0x45   : > { %306 = vmatpush.bf16.msra.mxu0 %v666_v2  ;;  %v287_v16 = vrot.slane %v286_v15, 2 }
  0x47   : > { %vm288_vm4 = vcmp.lt.s32.totalorder %v286_v15, %v287_v16 }
  0x48   : > { %v289_v18 = vsel %vm288_vm4, %v286_v15, %v287_v16 }
  0x49   : > { %307 = vmatpush.bf16.msra.mxu0 %v666_v2  ;;  %v290_v19 = vrot.slane %v289_v18, 1 }
  0x4b   : > { %vm291_vm5 = vcmp.lt.s32.totalorder %v289_v18, %v290_v19 }
  0x4c   : > { %v292_v20 = vsel %vm291_vm5, %v289_v18, %v290_v19 }
  0x4d   : > { %308 = vmatpush.bf16.msra.mxu0 %v666_v2  ;;  %vm293_vm7 = vcmp.eq.s32.totalorder %v272_v10, %v292_v20 }
  0x4e   : > { %vm296_vm8 = vmor %vm293_vm7, %vm295_vm6 }
  0x4f   : > { %vm449_vm9 = vmpackc.low %vm296_vm8, %vm296_vm8 }
  0x50   : > { %450 = vmatmul.msk.bf16.vlgmr.msra.gmra.mxu0 %vm449_vm9, %v667_v21 }
  0xcd   : > { %v310_v23 = vpop.f32.mrf.mxu0 }
  0xce   : > { %v314_v24 = vadd.f32 %v310_v23, %v297_v22 }
  0xd0   : > { %316 = vst.msk [vmem:[%s802_s27] sm:$0xf] %vm263_vm0, %v314_v24 }
  0xd5   : > { %v312_v25 = vpop.f32.mrf.mxu0 }
  0xd6 PF: > { %s18_s16 = sadd.s32 1, %s663_s16   ;;  %s844_s9 = smov %s639_s10 }
  0xd7   : > { %p15_p5 = scmp.ge.s32.totalorder %s18_s16, 6   ;;  %s845_s10 = smov %s643_s11 }
  0xd8   : > { %s846_s11 = smov %s755_s5  ;;  %s847_s12 = smov %s655_s14 }
  0xd9   : > { %s848_s13 = smov %s659_s15  ;;  %s849_s14 = smov %s852_s18 }
  0xda   : > { %s850_s15 = smov %s856_s19  ;;  %17 = sbr.rel (!%p15_p5) target bundleno = 7 (0x7), region = 89 }
  0xdf   :  { %344 = vsyncpa [#allocation3], 1 }
  0xe0   :  { %346 = vsyncpa [#allocation3 + $0x1], 1 }
  0xe1   :  { %347 = vsyncpa [#allocation5], 1 }
  0xe2   :  { %349 = vsyncpa [#allocation5 + $0x1], 1 }

</bundles_post_ra>
